<compile_context>
chip_gen: v6e
topology: v6e:2x2x1
jax: 0.10.0
libtpu: 0.0.40
codegen_flags: <defaults>
</compile_context>

<pallas_src>
import jax
import jax.numpy as jnp
from jax.experimental import pallas as pl
from jax.experimental.pallas import tpu as pltpu


def _round_up(n, m):
    return ((n + m - 1) // m) * m


def _pick_tile_b(B, max_tile=1024):
    """Largest batch tile (mult. of 8) with <=~12.5% padding waste; prefer
    >=2 grid steps so the 'parallel' axis can use both TensorCores on v7x."""
    Bp8 = _round_up(max(B, 1), 8)
    cands = [t for t in (1024, 512, 256, 128, 64, 32, 16, 8) if t <= max_tile]
    for want_two_steps in (True, False):
        for t in cands:
            if want_two_steps and 2 * t > Bp8:
                continue
            Bp = _round_up(B, t)
            if (Bp - B) * 8 <= Bp:          # padded rows <= 12.5% of the grid
                return t
    return 8


def _mlp_kernel(h1_ref, w2_ref, b2_ref, w3_ref, b3_ref, out_ref):
    # h1 is the fc1 pre-activation (computed in the wrapper, bf16).
    h = jnp.maximum(h1_ref[...], 0)                               # relu1
    h = jnp.dot(h, w2_ref[...],
                preferred_element_type=jnp.float32) + b2_ref[...]  # fc2
    h = jnp.maximum(h, 0.0)                                        # relu2
    # dropout: eval-mode identity
    out_ref[...] = (jnp.dot(h.astype(jnp.bfloat16), w3_ref[...],
                            preferred_element_type=jnp.float32)
                    + b3_ref[...]).astype(out_ref.dtype)           # fc3


def prepare_params(params):
    """One-time weight prep: fold the embedding tables into fc1.

    params = (t1, t2, w1, b1, w2, b2, w3, b3); Linear weights stored (in, out).
    """
    t1, t2, w1, b1, w2, b2, w3, b3 = params
    E1, E2 = t1.shape[1], t2.shape[1]
    F = w1.shape[0] - E1 - E2
    return dict(
        F=F,
        w1_num=w1[:F, :],                 # (F, H)
        t1_fused=t1 @ w1[F:F + E1, :],    # (V1, H)
        t2_fused=t2 @ w1[F + E1:, :],     # (V2, H)
        b1=b1, w2=w2, b2=b2, w3=w3, b3=b3)


def categorical_classifier_forward(x, prepped, *, out_dtype=jnp.float32,
                                   max_tile_b=1024):
    """x: (B, num_input_dim + 2) float32; last two columns carry integer-valued
    categorical codes (same convention as the torch forward).
    Returns (B, hidden_dim) in `out_dtype` (default f32)."""
    F = prepped["F"]
    w2, b2, w3, b3 = prepped["w2"], prepped["b2"], prepped["w3"], prepped["b3"]
    B = x.shape[0]
    H = w3.shape[1]

    Hp = _round_up(H, 128)
    tile_b = _pick_tile_b(B, max_tile_b)
    Bp = _round_up(B, tile_b)

    # ---- categorical indices: round before the int cast (robust) -----------
    i1 = jnp.round(x[:, -2]).astype(jnp.int32)
    i2 = jnp.round(x[:, -1]).astype(jnp.int32)

    # ---- fc1 fully in the wrapper (f32), one bf16 cast ----------------------
    h1 = (x[:, :F] @ prepped["w1_num"]
          + jnp.take(prepped["t1_fused"], i1, axis=0)
          + jnp.take(prepped["t2_fused"], i2, axis=0)
          + prepped["b1"])                                         # (B, H) f32

    def pad2(a, rows, cols):
        return jnp.pad(a, ((0, rows - a.shape[0]), (0, cols - a.shape[1])))

    h1p = pad2(h1, Bp, Hp).astype(jnp.bfloat16)                    # (Bp, Hp)
    w2p = pad2(w2, Hp, Hp).astype(jnp.bfloat16)
    w3p = pad2(w3, Hp, Hp).astype(jnp.bfloat16)
    b2p = pad2(b2.reshape(1, -1), 1, Hp)                           # f32
    b3p = pad2(b3.reshape(1, -1), 1, Hp)                           # f32

    # ---- explicit VMEM budget ------------------------------------------------
    out_bytes = jnp.dtype(out_dtype).itemsize
    resident = 2 * Hp * Hp * 2 + 2 * Hp * 4          # W2+W3 (bf16, 1-buffered) + b2+b3
    act_tile = tile_b * Hp * (2 + out_bytes)         # in (bf16) + out per tile
    vmem_limit = int(resident + 2 * act_tile + (4 << 20))   # 2x: double-buffered acts
    vmem_limit = max(8 << 20, min(vmem_limit, 64 << 20))    # cap at v7x physical

    def row_spec(cols):
        return pl.BlockSpec((tile_b, cols), lambda i: (i, 0))

    def const_spec(r, c):
        # Constant index_map -> single-buffer (double-buffering would only
        # duplicate the resident weights in VMEM).
        return pl.BlockSpec((r, c), lambda i: (0, 0),
                            pipeline_mode=pl.Buffered(1))

    out = pl.pallas_call(
        _mlp_kernel,
        out_shape=jax.ShapeDtypeStruct((Bp, Hp), out_dtype),
        grid=(Bp // tile_b,),
        in_specs=[
            row_spec(Hp),            # fc1 pre-activation tile
            const_spec(Hp, Hp),      # W2 (resident)
            const_spec(1, Hp),       # b2
            const_spec(Hp, Hp),      # W3 (resident)
            const_spec(1, Hp),       # b3
        ],
        out_specs=row_spec(Hp),
        compiler_params=pltpu.CompilerParams(
            dimension_semantics=("parallel",),
            vmem_limit_bytes=vmem_limit),
    )(h1p, w2p, b2p, w3p, b3p)

    return out[:B, :H]


def _init_params(key, num_input_dim, dictionaries, embed_dims, hidden_dim):
    ks = jax.random.split(key, 8)
    in_dim = num_input_dim + embed_dims[0] + embed_dims[1]
    t1 = jax.random.normal(ks[0], (dictionaries[0], embed_dims[0]), jnp.float32)
    t2 = jax.random.normal(ks[1], (dictionaries[1], embed_dims[1]), jnp.float32)
    # Linear weights stored as (in, out) == torch weight.T
    w1 = jax.random.normal(ks[2], (in_dim, hidden_dim), jnp.float32) * 0.1
    b1 = jax.random.normal(ks[3], (hidden_dim,), jnp.float32) * 0.1
    w2 = jax.random.normal(ks[4], (hidden_dim, hidden_dim), jnp.float32) * 0.1
    b2 = jax.random.normal(ks[5], (hidden_dim,), jnp.float32) * 0.1
    w3 = jax.random.normal(ks[6], (hidden_dim, hidden_dim), jnp.float32) * 0.1
    b3 = jax.random.normal(ks[7], (hidden_dim,), jnp.float32) * 0.1
    return (t1, t2, w1, b1, w2, b2, w3, b3)


def _reference_forward(x, params):
    """Pure-f32 reference matching the PyTorch module (eval mode)."""
    t1, t2, w1, b1, w2, b2, w3, b3 = params
    x_num = x[:, :-2]
    i1 = jnp.round(x[:, -2]).astype(jnp.int32)
    i2 = jnp.round(x[:, -1]).astype(jnp.int32)
    e1 = jnp.take(t1, i1, axis=0)
    e2 = jnp.take(t2, i2, axis=0)
    h = jnp.concatenate([x_num, e1, e2], axis=1)
    h = jnp.maximum(h @ w1 + b1, 0.0)
    h = jnp.maximum(h @ w2 + b2, 0.0)
    return h @ w3 + b3


if __name__ == "__main__":
    # Small deterministic config
    num_input_dim = 6
    dictionaries = (5, 7)
    embed_dims = (3, 4)
    hidden_dim = 32
    B = 8

    key = jax.random.PRNGKey(0)
    k_params, k_num, k_i1, k_i2 = jax.random.split(key, 4)
    params = _init_params(k_params, num_input_dim, dictionaries, embed_dims,
                          hidden_dim)
    prepped = prepare_params(params)   # one-time weight prep (fused tables)

    x_num = jax.random.normal(k_num, (B, num_input_dim), jnp.float32)
    cat1 = jax.random.randint(k_i1, (B, 1), 0, dictionaries[0]).astype(jnp.float32)
    cat2 = jax.random.randint(k_i2, (B, 1), 0, dictionaries[1]).astype(jnp.float32)
    x = jnp.concatenate([x_num, cat1, cat2], axis=1)   # (B, num_input_dim + 2)

    fwd = jax.jit(lambda xx: categorical_classifier_forward(xx, prepped))
    out = jax.block_until_ready(fwd(x))

    ref = _reference_forward(x, params)
    assert out.shape == (B, hidden_dim)
    # bf16 MXU inputs with f32 accumulation -> loosened tolerance vs f32 ref.
    assert jnp.allclose(out, ref, atol=5e-2, rtol=5e-2), "mismatch vs reference"
    print("KERNEL_OK")
</pallas_src>

<mosaic_0001>
module attributes {stable_mosaic.version = 11 : i64} {
  func.func @_mlp_kernel(%arg0: i32, %arg1: memref<8x128xbf16, #tpu.memory_space<vmem>>, %arg2: memref<128x128xbf16, #tpu.memory_space<vmem>>, %arg3: memref<1x128xf32, #tpu.memory_space<vmem>>, %arg4: memref<128x128xbf16, #tpu.memory_space<vmem>>, %arg5: memref<1x128xf32, #tpu.memory_space<vmem>>, %arg6: memref<8x128xf32, #tpu.memory_space<vmem>>) attributes {dimension_semantics = [#tpu.dimension_semantics<parallel>], iteration_bounds = array<i64: 1>, scalar_prefetch = 0 : i64, scratch_operands = 0 : i64, tpu.core_type = #tpu.core_type<tc>, window_params = [{transform_indices = @transform_0, window_bounds = array<i64: 8, 128>}, {pipeline_mode = #tpu.pipeline_mode<synchronous>, transform_indices = @transform_1, window_bounds = array<i64: 128, 128>}, {pipeline_mode = #tpu.pipeline_mode<synchronous>, transform_indices = @transform_2, window_bounds = array<i64: 1, 128>}, {pipeline_mode = #tpu.pipeline_mode<synchronous>, transform_indices = @transform_3, window_bounds = array<i64: 128, 128>}, {pipeline_mode = #tpu.pipeline_mode<synchronous>, transform_indices = @transform_4, window_bounds = array<i64: 1, 128>}, {transform_indices = @transform_5, window_bounds = array<i64: 8, 128>}]} {
    %c0 = arith.constant 0 : index
    %c0_0 = arith.constant 0 : index
    %0 = vector.load %arg1[%c0, %c0_0] : memref<8x128xbf16, #tpu.memory_space<vmem>>, vector<8x128xbf16>
    %cst = arith.constant 0.000000e+00 : bf16
    %1 = vector.broadcast %cst : bf16 to vector<8x128xbf16>
    %2 = arith.maximumf %0, %1 : vector<8x128xbf16>
    %c0_1 = arith.constant 0 : index
    %c0_2 = arith.constant 0 : index
    %3 = vector.load %arg2[%c0_1, %c0_2] : memref<128x128xbf16, #tpu.memory_space<vmem>>, vector<128x128xbf16>
    %cst_3 = arith.constant dense<0.000000e+00> : vector<8x128xf32>
    %4 = tpu.matmul %2, %3, %cst_3 {dimension_numbers = #tpu.dot_dimension_numbers<[1], [0], [0], [1], [0, 0, 1, 1], [], []>} : vector<8x128xbf16>, vector<128x128xbf16>, vector<8x128xf32> -> vector<8x128xf32>
    %c0_4 = arith.constant 0 : index
    %c0_5 = arith.constant 0 : index
    %5 = vector.load %arg3[%c0_4, %c0_5] : memref<1x128xf32, #tpu.memory_space<vmem>>, vector<1x128xf32>
    %6 = vector.broadcast %5 : vector<1x128xf32> to vector<8x128xf32>
    %7 = arith.addf %4, %6 : vector<8x128xf32>
    %cst_6 = arith.constant 0.000000e+00 : f32
    %8 = vector.broadcast %cst_6 : f32 to vector<8x128xf32>
    %9 = arith.maximumf %7, %8 : vector<8x128xf32>
    %10 = arith.truncf %9 : vector<8x128xf32> to vector<8x128xbf16>
    %c0_7 = arith.constant 0 : index
    %c0_8 = arith.constant 0 : index
    %11 = vector.load %arg4[%c0_7, %c0_8] : memref<128x128xbf16, #tpu.memory_space<vmem>>, vector<128x128xbf16>
    %cst_9 = arith.constant dense<0.000000e+00> : vector<8x128xf32>
    %12 = tpu.matmul %10, %11, %cst_9 {dimension_numbers = #tpu.dot_dimension_numbers<[1], [0], [0], [1], [0, 0, 1, 1], [], []>} : vector<8x128xbf16>, vector<128x128xbf16>, vector<8x128xf32> -> vector<8x128xf32>
    %c0_10 = arith.constant 0 : index
    %c0_11 = arith.constant 0 : index
    %13 = vector.load %arg5[%c0_10, %c0_11] : memref<1x128xf32, #tpu.memory_space<vmem>>, vector<1x128xf32>
    %14 = vector.broadcast %13 : vector<1x128xf32> to vector<8x128xf32>
    %15 = arith.addf %12, %14 : vector<8x128xf32>
    %c0_12 = arith.constant 0 : index
    %c0_13 = arith.constant 0 : index
    %16 = vector.load %arg6[%c0_12, %c0_13] : memref<8x128xf32, #tpu.memory_space<vmem>>, vector<8x128xf32>
    tpu.vector_store %arg6[%c0_12, %c0_13], %15 {strides = array<i32>} : memref<8x128xf32, #tpu.memory_space<vmem>>, vector<8x128xf32>,
    return
  }
  func.func @transform_0(%arg0: i32) -> (i32, i32) {
    %c0_i32 = arith.constant 0 : i32
    %c0_i32_0 = arith.constant 0 : i32
    return %arg0, %c0_i32 : i32, i32
  }
  func.func @transform_1(%arg0: i32) -> (i32, i32) {
    %c0_i32 = arith.constant 0 : i32
    %c0_i32_0 = arith.constant 0 : i32
    %c0_i32_1 = arith.constant 0 : i32
    return %c0_i32, %c0_i32_0 : i32, i32
  }
  func.func @transform_2(%arg0: i32) -> (i32, i32) {
    %c0_i32 = arith.constant 0 : i32
    %c0_i32_0 = arith.constant 0 : i32
    %c0_i32_1 = arith.constant 0 : i32
    return %c0_i32, %c0_i32_0 : i32, i32
  }
  func.func @transform_3(%arg0: i32) -> (i32, i32) {
    %c0_i32 = arith.constant 0 : i32
    %c0_i32_0 = arith.constant 0 : i32
    %c0_i32_1 = arith.constant 0 : i32
    return %c0_i32, %c0_i32_0 : i32, i32
  }
  func.func @transform_4(%arg0: i32) -> (i32, i32) {
    %c0_i32 = arith.constant 0 : i32
    %c0_i32_0 = arith.constant 0 : i32
    %c0_i32_1 = arith.constant 0 : i32
    return %c0_i32, %c0_i32_0 : i32, i32
  }
  func.func @transform_5(%arg0: i32) -> (i32, i32) {
    %c0_i32 = arith.constant 0 : i32
    %c0_i32_0 = arith.constant 0 : i32
    return %arg0, %c0_i32 : i32, i32
  }
}

</mosaic_0001>

<bundles_post_ra>
// kernel: _lambda_.1
= control target key start
LH: loop header
LB: loop body
LE: loop exit
PB: predicated region body
PF: predicated region fallthrough
CT: control target
= control target key end

     0   :  { %v381_v1 = vmov 0.0   ;;  %vm382_vm0 = vmmov 0   ;;  %s475_s0 = inlined_call_operand.vmem [shape: bf16[8,128], index: 0, kind: input, shape index: {}]   ;;  %s476_s1 = inlined_call_operand.vmem [shape: bf16[128,128], index: 1, kind: input, shape index: {}]   ;;  %s477_s2 = inlined_call_operand.vmem [shape: f32[1,128], index: 2, kind: input, shape index: {}]   ;;  %s478_s3 = inlined_call_operand.vmem [shape: bf16[128,128], index: 3, kind: input, shape index: {}]   ;;  %s479_s4 = inlined_call_operand.vmem [shape: f32[1,128], index: 4, kind: input, shape index: {}]   ;;  %s480_s5 = inlined_call_operand.hbm [shape: f32[8,128], index: 5, kind: output, shape index: {}]  }
   0x1   :  { %v343_v0 = vld [vmem:[%s476_s1 + $0x38] sm:$0xff]   ;;  %299 = vmatprep.subr.bf16.mxu0 %v381_v1  ;;  %319 = vmatprep.subr.bf16.mxu1 %v381_v1  ;;  %v344_v2 = vld [vmem:[%s476_s1 + $0x30] sm:$0xff]   ;;  %v345_v3 = vld [vmem:[%s476_s1 + $0x28] sm:$0xff]  }
   0x2   :  { %300 = vmatpush3.bf16.msra.mxu0 %v343_v0  ;;  %315 = vmatprep.mubr.msk.bf16.mxu0 %vm382_vm0, %v381_v1  ;;  %v351_v4 = vld [vmem:[%s478_s3 + $0x38] sm:$0xff]   ;;  %v346_v5 = vld [vmem:[%s476_s1 + $0x20] sm:$0xff]   ;;  %v352_v6 = vld [vmem:[%s478_s3 + $0x30] sm:$0xff]  }
   0x3   :  { %301 = vmatprep.subr.bf16.mxu0 %v381_v1  ;;  %335 = vmatprep.mubr.msk.bf16.mxu1 %vm382_vm0, %v381_v1  ;;  %v347_v7 = vld [vmem:[%s476_s1 + $0x18] sm:$0xff]   ;;  %v353_v8 = vld [vmem:[%s478_s3 + $0x28] sm:$0xff]  }
   0x4   :  { %320 = vmatpush3.bf16.msra.mxu1 %v351_v4 }
   0x5   :  { %321 = vmatprep.subr.bf16.mxu1 %v381_v1 }
   0x6   :  { %302 = vmatpush3.bf16.msra.mxu0 %v344_v2 }
   0x7   :  { %303 = vmatprep.subr.bf16.mxu0 %v381_v1 }
   0x8   :  { %322 = vmatpush3.bf16.msra.mxu1 %v352_v6 }
   0x9   :  { %323 = vmatprep.subr.bf16.mxu1 %v381_v1 }
   0xa   :  { %304 = vmatpush3.bf16.msra.mxu0 %v345_v3 }
   0xb   :  { %305 = vmatprep.subr.bf16.mxu0 %v381_v1 }
   0xe   :  { %306 = vmatpush3.bf16.msra.mxu0 %v346_v5 }
   0xf   :  { %307 = vmatprep.subr.bf16.mxu0 %v381_v1 }
  0x10   :  { %10 = vsyncpa [#allocation3], 0  ;;  %v348_v9 = vld [vmem:[%s476_s1 + $0x10] sm:$0xff]   ;;  %324 = vmatpush3.bf16.msra.mxu1 %v353_v8  ;;  %v354_v10 = vld [vmem:[%s478_s3 + $0x20] sm:$0xff]   ;;  %v383_v16 = vmov 0   ;;  %s384_s29 = smov [#allocation2]  }
  0x11   :  { %325 = vmatprep.subr.bf16.mxu1 %v381_v1  ;;  %v349_v11 = vld [vmem:[%s476_s1 + $0x8] sm:$0xff]   ;;  %v355_v12 = vld [vmem:[%s478_s3 + $0x18] sm:$0xff]   ;;  %v350_v13 = vld [vmem:[%s476_s1] sm:$0xff]   ;;  %s255_s30 = sshll.u32 %s384_s29, 4  ;;  %s256_s30 = int_to_ptr.vmem [resolvable:$true] %s255_s30 }
  0x12   :  { %308 = vmatpush3.bf16.msra.mxu0 %v347_v7  ;;  %v22_v14 = vld [vmem:[%s475_s0] sm:$0xf]  ;;  %v356_v15 = vld [vmem:[%s478_s3 + $0x10] sm:$0xff]   ;;  %v357_v18 = vld [vmem:[%s478_s3 + $0x8] sm:$0xff]   ;;  %p364_p1 = scmp.lt.s32.totalorder %s256_s30, %s256_s30 }
  0x13   :  { %309 = vmatprep.subr.bf16.mxu0 %v381_v1  ;;  %v23_v17 = vmax.bf16 %v383_v16, %v22_v14  ;;  %v358_v19 = vld [vmem:[%s478_s3] sm:$0xff]  }
  0x14   :  { %326 = vmatpush3.bf16.msra.mxu1 %v354_v10  ;;  %v263_v20 = vld [vmem:[%s477_s2] ss:$0 sm:$0xff]  ;;  %s359_s2 = scalar_lea.vmem %s256_s30, 128 }
  0x15   :  { %327 = vmatprep.subr.bf16.mxu1 %v381_v1  ;;  %v272_v28 = vld [vmem:[%s479_s4] ss:$0 sm:$0xff]  ;;  %p360_p0 = scmp.ne.s32.totalorder %s256_s30, %s359_s2  ;;  %p365_p2 = scmp.lt.s32.totalorder %s359_s2, %s359_s2 }
  0x16   :  { %310 = vmatpush3.bf16.msra.mxu0 %v348_v9 }
  0x17   :  { %311 = vmatprep.subr.bf16.mxu0 %v381_v1  ;;  %p366_p3 = por %p365_p2, %p364_p1 }
  0x18   :  { %328 = vmatpush3.bf16.msra.mxu1 %v355_v12 }
  0x19   :  { %329 = vmatprep.subr.bf16.mxu1 %v381_v1  ;;  %p367_p4 = pnand %p366_p3, %p360_p0 }
  0x1a   :  { %312 = vmatpush3.bf16.msra.mxu0 %v349_v11 }
  0x1b   :  { %313 = vmatprep.subr.bf16.mxu0 %v381_v1 }
  0x1c   :  { %330 = vmatpush3.bf16.msra.mxu1 %v356_v15 }
  0x1d   :  { %331 = vmatprep.subr.bf16.mxu1 %v381_v1 }
  0x1e   :  { %314 = vmatpush3.bf16.msra.mxu0 %v350_v13 }
  0x20   :  { %332 = vmatpush3.bf16.msra.mxu1 %v357_v18 }
  0x21   :  { %316 = vmatmul.mubr.bf16.vlgmr.msra.gmra.mxu0 %v23_v17  ;;  %333 = vmatprep.subr.bf16.mxu1 %v381_v1 }
  0x24   :  { %334 = vmatpush3.bf16.msra.mxu1 %v358_v19 }
  0xe1   :  { %v129_v21 = vpop.f32.mrf.mxu0 }
  0xe2   :  { %v130_v22 = vadd.f32 %v263_v20, %v129_v21 }
  0xe3   :  { %v317_v23 = vpop.f32.mrf.mxu0 }
  0xe4   :  { %v135_v24 = vmax.f32 %v130_v22, 0.0 }
  0xe5   :  { %v132_v25 = vpop.f32.mrf.mxu0 }
  0xe6   :  { %v136_v26 = vpack.c.bf16 %v135_v24, %v135_v24 }
  0xe7   :  { %v318_v27 = vpop.f32.mrf.mxu0 }
  0xe8   :  { %336 = vmatmul.mubr.bf16.vlgmr.msra.gmra.mxu1 %v136_v26 }
 0x1a8   :  { %v242_v29 = vpop.f32.mrf.mxu1 }
 0x1a9   :  { %v243_v30 = vadd.f32 %v272_v28, %v242_v29 }
 0x1aa   :  { %v337_v31 = vpop.f32.mrf.mxu1 }
 0x1ab   :  { %248 = vst [vmem:[#allocation2] sm:$0xff] %v243_v30 }
 0x1ac   :  { %v245_v32 = vpop.f32.mrf.mxu1 }
 0x1ad   :  { %370 = shalt.err (!%p367_p4)
}
 0x1ae   :  { %258 = dma.vmem_to_hbm [thread:$0]  %s256_s30, 128, %s480_s5, [#allocation3]   ;;  %v338_v33 = vpop.f32.mrf.mxu1 }
 0x1af   :  { %379 = dma.done.wait [#allocation3], 128  }
 0x1b0   :  { %380 = vsyncadd [#allocation3], 4294967168 }
 0x1b1   :  { %262 = vsyncpa [#allocation3], 1 }

</bundles_post_ra>
